<compile_context>
chip_gen: v6e
topology: v6e:2x2x1
jax: 0.10.0
libtpu: 0.0.40
codegen_flags: <defaults>
</compile_context>

<pallas_src>
import functools

import jax
import jax.numpy as jnp
from jax.experimental import pallas as pl
from jax.experimental.pallas import tpu as pltpu

D_IN, D_HID, D_OUT = 784, 256, 10
N_PAD = 128   # lane-dense output width (real logits live in [:, :10])


def mlp_kernel(x_ref, w1_ref, b1_ref, w2_ref, b2_ref, o_ref):
    # x arrives as f32 straight from HBM; cast to bf16 on the VPU (free slack)
    # so both matmuls run on the MXU with f32 accumulation.
    x = x_ref[...].astype(jnp.bfloat16)
    h = jnp.dot(x, w1_ref[...], preferred_element_type=jnp.float32)
    h = jnp.maximum(h + b1_ref[...], 0.0)               # f32 bias + ReLU (VPU)
    out = jnp.dot(h.astype(jnp.bfloat16), w2_ref[...],
                  preferred_element_type=jnp.float32)
    o_ref[...] = (out + b2_ref[...]).astype(o_ref.dtype)  # bf16 writeback


@functools.partial(jax.jit, static_argnames=("tm",))
def mlp_forward(x, w1, b1, w2, b2, *, tm=512):
    """x: [B, 784] f32. w1: [784, 256], b1: [256], w2: [256, 10], b2: [10].

    Weights are stored [in_features, out_features] (transposed vs. nn.Linear's
    [out, in]) so the kernel computes plain x @ W + b.
    """
    B = x.shape[0]
    if B >= tm:
        assert tm % 16 == 0, "batch tile must be a multiple of 16 (bf16 packing)"
        tm_eff = tm
    else:
        # Small batch: one block covering the whole batch (full-dim block is
        # always legal, no padding round trip needed).
        tm_eff = B
    grid = (pl.cdiv(B, tm_eff),)

    # Tiny one-time weight prep (DMA'd once; negligible vs. x traffic).
    w1b = w1.astype(jnp.bfloat16)
    b1f = b1.reshape(1, D_HID).astype(jnp.float32)
    w2b = jnp.pad(w2, ((0, 0), (0, N_PAD - D_OUT))).astype(jnp.bfloat16)
    b2f = jnp.pad(b2.reshape(1, D_OUT),
                  ((0, 0), (0, N_PAD - D_OUT))).astype(jnp.float32)

    out_padded = pl.pallas_call(
        mlp_kernel,
        out_shape=jax.ShapeDtypeStruct((B, N_PAD), jnp.bfloat16),
        grid=grid,
        in_specs=[
            pl.BlockSpec((tm_eff, D_IN), lambda i: (i, 0)),    # x tile per step
            pl.BlockSpec((D_IN, D_HID), lambda i: (0, 0)),     # W1 resident
            pl.BlockSpec((1, D_HID), lambda i: (0, 0)),        # b1 resident
            pl.BlockSpec((D_HID, N_PAD), lambda i: (0, 0)),    # W2 resident
            pl.BlockSpec((1, N_PAD), lambda i: (0, 0)),        # b2 resident
        ],
        out_specs=pl.BlockSpec((tm_eff, N_PAD), lambda i: (i, 0)),
        compiler_params=pltpu.CompilerParams(
            dimension_semantics=("parallel",)),                # megacore on v7x
    )(x, w1b, b1f, w2b, b2f)

    # Slice off the lane padding; return f32 logits to match the nn.Module.
    return out_padded[:, :D_OUT].astype(jnp.float32)


if __name__ == "__main__":
    key = jax.random.PRNGKey(0)
    k_x, k_w1, k_b1, k_w2, k_b2 = jax.random.split(key, 5)

    B = 32  # small demo batch

    x = jax.random.normal(k_x, (B, D_IN), dtype=jnp.float32)
    w1 = jax.random.normal(k_w1, (D_IN, D_HID), dtype=jnp.float32) * 0.02
    b1 = jax.random.normal(k_b1, (D_HID,), dtype=jnp.float32) * 0.01
    w2 = jax.random.normal(k_w2, (D_IN // 3 + 0 * D_HID, D_OUT), dtype=jnp.float32) * 0.02 \
        if False else jax.random.normal(k_w2, (D_HID, D_OUT), dtype=jnp.float32) * 0.02
    b2 = jax.random.normal(k_b2, (D_OUT,), dtype=jnp.float32) * 0.01

    # Pure-JAX f32 reference (bf16 MXU path + bf16 store -> loose tolerance).
    ref = jnp.maximum(x @ w1 + b1, 0.0) @ w2 + b2

    # 1) Default config: single block covering the whole small batch.
    out = jax.block_until_ready(mlp_forward(x, w1, b1, w2, b2))
    assert out.shape == (B, D_OUT)
    assert jnp.allclose(out, ref, atol=3e-2, rtol=3e-2), float(
        jnp.max(jnp.abs(out - ref)))

    # 2) tm=16 -> 2 grid steps: exercises the tiled/pipelined path.
    out2 = jax.block_until_ready(mlp_forward(x, w1, b1, w2, b2, tm=16))
    assert out2.shape == (B, D_OUT)
    assert jnp.allclose(out2, ref, atol=3e-2, rtol=3e-2), float(
        jnp.max(jnp.abs(out2 - ref)))

    print("KERNEL_OK")
</pallas_src>

<mosaic_0001>
module attributes {stable_mosaic.version = 11 : i64} {
  func.func @mlp_kernel(%arg0: i32, %arg1: memref<32x784xf32, #tpu.memory_space<vmem>>, %arg2: memref<784x256xbf16, #tpu.memory_space<vmem>>, %arg3: memref<1x256xf32, #tpu.memory_space<vmem>>, %arg4: memref<256x128xbf16, #tpu.memory_space<vmem>>, %arg5: memref<1x128xf32, #tpu.memory_space<vmem>>, %arg6: memref<32x128xbf16, #tpu.memory_space<vmem>>) attributes {dimension_semantics = [#tpu.dimension_semantics<parallel>], iteration_bounds = array<i64: 1>, scalar_prefetch = 0 : i64, scratch_operands = 0 : i64, tpu.core_type = #tpu.core_type<tc>, window_params = [{transform_indices = @transform_0, window_bounds = array<i64: 32, 784>}, {pipeline_mode = #tpu.pipeline_mode<synchronous>, transform_indices = @transform_1, window_bounds = array<i64: 784, 256>}, {pipeline_mode = #tpu.pipeline_mode<synchronous>, transform_indices = @transform_2, window_bounds = array<i64: 1, 256>}, {pipeline_mode = #tpu.pipeline_mode<synchronous>, transform_indices = @transform_3, window_bounds = array<i64: 256, 128>}, {pipeline_mode = #tpu.pipeline_mode<synchronous>, transform_indices = @transform_4, window_bounds = array<i64: 1, 128>}, {transform_indices = @transform_5, window_bounds = array<i64: 32, 128>}]} {
    %c0 = arith.constant 0 : index
    %c0_0 = arith.constant 0 : index
    %0 = vector.load %arg1[%c0, %c0_0] : memref<32x784xf32, #tpu.memory_space<vmem>>, vector<32x784xf32>
    %1 = arith.truncf %0 : vector<32x784xf32> to vector<32x784xbf16>
    %c0_1 = arith.constant 0 : index
    %c0_2 = arith.constant 0 : index
    %2 = vector.load %arg2[%c0_1, %c0_2] : memref<784x256xbf16, #tpu.memory_space<vmem>>, vector<784x256xbf16>
    %cst = arith.constant dense<0.000000e+00> : vector<32x256xf32>
    %3 = tpu.matmul %1, %2, %cst {dimension_numbers = #tpu.dot_dimension_numbers<[1], [0], [0], [1], [0, 0, 1, 1], [], []>} : vector<32x784xbf16>, vector<784x256xbf16>, vector<32x256xf32> -> vector<32x256xf32>
    %c0_3 = arith.constant 0 : index
    %c0_4 = arith.constant 0 : index
    %4 = vector.load %arg3[%c0_3, %c0_4] : memref<1x256xf32, #tpu.memory_space<vmem>>, vector<1x256xf32>
    %5 = vector.broadcast %4 : vector<1x256xf32> to vector<32x256xf32>
    %6 = arith.addf %3, %5 : vector<32x256xf32>
    %cst_5 = arith.constant 0.000000e+00 : f32
    %7 = vector.broadcast %cst_5 : f32 to vector<32x256xf32>
    %8 = arith.maximumf %6, %7 : vector<32x256xf32>
    %9 = arith.truncf %8 : vector<32x256xf32> to vector<32x256xbf16>
    %c0_6 = arith.constant 0 : index
    %c0_7 = arith.constant 0 : index
    %10 = vector.load %arg4[%c0_6, %c0_7] : memref<256x128xbf16, #tpu.memory_space<vmem>>, vector<256x128xbf16>
    %cst_8 = arith.constant dense<0.000000e+00> : vector<32x128xf32>
    %11 = tpu.matmul %9, %10, %cst_8 {dimension_numbers = #tpu.dot_dimension_numbers<[1], [0], [0], [1], [0, 0, 1, 1], [], []>} : vector<32x256xbf16>, vector<256x128xbf16>, vector<32x128xf32> -> vector<32x128xf32>
    %c0_9 = arith.constant 0 : index
    %c0_10 = arith.constant 0 : index
    %12 = vector.load %arg5[%c0_9, %c0_10] : memref<1x128xf32, #tpu.memory_space<vmem>>, vector<1x128xf32>
    %13 = vector.broadcast %12 : vector<1x128xf32> to vector<32x128xf32>
    %14 = arith.addf %11, %13 : vector<32x128xf32>
    %15 = arith.truncf %14 : vector<32x128xf32> to vector<32x128xbf16>
    %c0_11 = arith.constant 0 : index
    %c0_12 = arith.constant 0 : index
    %16 = vector.load %arg6[%c0_11, %c0_12] : memref<32x128xbf16, #tpu.memory_space<vmem>>, vector<32x128xbf16>
    tpu.vector_store %arg6[%c0_11, %c0_12], %15 {strides = array<i32>} : memref<32x128xbf16, #tpu.memory_space<vmem>>, vector<32x128xbf16>,
    return
  }
  func.func @transform_0(%arg0: i32) -> (i32, i32) {
    %c0_i32 = arith.constant 0 : i32
    %c0_i32_0 = arith.constant 0 : i32
    return %arg0, %c0_i32 : i32, i32
  }
  func.func @transform_1(%arg0: i32) -> (i32, i32) {
    %c0_i32 = arith.constant 0 : i32
    %c0_i32_0 = arith.constant 0 : i32
    %c0_i32_1 = arith.constant 0 : i32
    return %c0_i32, %c0_i32_0 : i32, i32
  }
  func.func @transform_2(%arg0: i32) -> (i32, i32) {
    %c0_i32 = arith.constant 0 : i32
    %c0_i32_0 = arith.constant 0 : i32
    %c0_i32_1 = arith.constant 0 : i32
    return %c0_i32, %c0_i32_0 : i32, i32
  }
  func.func @transform_3(%arg0: i32) -> (i32, i32) {
    %c0_i32 = arith.constant 0 : i32
    %c0_i32_0 = arith.constant 0 : i32
    %c0_i32_1 = arith.constant 0 : i32
    return %c0_i32, %c0_i32_0 : i32, i32
  }
  func.func @transform_4(%arg0: i32) -> (i32, i32) {
    %c0_i32 = arith.constant 0 : i32
    %c0_i32_0 = arith.constant 0 : i32
    %c0_i32_1 = arith.constant 0 : i32
    return %c0_i32, %c0_i32_0 : i32, i32
  }
  func.func @transform_5(%arg0: i32) -> (i32, i32) {
    %c0_i32 = arith.constant 0 : i32
    %c0_i32_0 = arith.constant 0 : i32
    return %arg0, %c0_i32 : i32, i32
  }
}

</mosaic_0001>

<bundles_post_ra>
// kernel: mlp_forward.1
= control target key start
LH: loop header
LB: loop body
LE: loop exit
PB: predicated region body
PF: predicated region fallthrough
CT: control target
= control target key end

     0   :  { %vm663_vm0 = vcmask 130048   ;;  %s1901_s1 = inlined_call_operand.vmem [shape: bf16[784,256], index: 1, kind: input, shape index: {}]   ;;  %s1902_s0 = inlined_call_operand.vmem [shape: f32[32,784], index: 0, kind: input, shape index: {}]   ;;  %s1903_s3 = inlined_call_operand.vmem [shape: bf16[256,128], index: 3, kind: input, shape index: {}]   ;;  %s1904_s2 = inlined_call_operand.vmem [shape: f32[1,256], index: 2, kind: input, shape index: {}]   ;;  %s1905_s4 = inlined_call_operand.vmem [shape: f32[1,128], index: 4, kind: input, shape index: {}]   ;;  %s1906_s5 = inlined_call_operand.vmem [shape: bf16[32,128], index: 5, kind: output, shape index: {}]  }
   0x1   :  { %v1267_v0 = vld [vmem:[%s1901_s1 + $0x74] ss:$8 sps:$4 sm:$0xff]   ;;  %v1269_v1 = vld [vmem:[%s1901_s1 + $0x70] ss:$8 sps:$4 sm:$0xff]   ;;  %v1273_v4 = vld [vmem:[%s1901_s1 + $0x64] ss:$8 sps:$4 sm:$0xff]  }
   0x2   :  { %670 = vmatprep.subr.bf16.mxu0 %v1267_v0  ;;  %v1270_v2 = vld [vmem:[%s1901_s1 + $0x174] ss:$8 sps:$4 sm:$0xff]   ;;  %v1272_v3 = vld [vmem:[%s1901_s1 + $0x170] ss:$8 sps:$4 sm:$0xff]   ;;  %v1275_v5 = vld [vmem:[%s1901_s1 + $0x60] ss:$8 sps:$4 sm:$0xff]  }
   0x3   :  { %671 = vmatpush1.bf16.msra.mxu0 %v1269_v1  ;;  %723 = vmatprep.subr.bf16.mxu1 %v1270_v2  ;;  %v1276_v6 = vld [vmem:[%s1901_s1 + $0x164] ss:$8 sps:$4 sm:$0xff]   ;;  %v1278_v7 = vld [vmem:[%s1901_s1 + $0x160] ss:$8 sps:$4 sm:$0xff]   ;;  %v1279_v8 = vld [vmem:[%s1901_s1 + $0x54] ss:$8 sps:$4 sm:$0xff]  }
   0x4   :  { %724 = vmatpush1.bf16.msra.mxu1 %v1272_v3  ;;  %672 = vmatprep.subr.bf16.mxu0 %v1273_v4  ;;  %v1281_v9 = vld [vmem:[%s1901_s1 + $0x50] ss:$8 sps:$4 sm:$0xff]   ;;  %v1282_v10 = vld [vmem:[%s1901_s1 + $0x154] ss:$8 sps:$4 sm:$0xff]   ;;  %v1285_v11 = vld [vmem:[%s1901_s1 + $0x44] ss:$8 sps:$4 sm:$0xff]  }
   0x5   :  { %725 = vmatprep.subr.bf16.mxu1 %v1276_v6  ;;  %v1284_v12 = vld [vmem:[%s1901_s1 + $0x150] ss:$8 sps:$4 sm:$0xff]   ;;  %v1288_v13 = vld [vmem:[%s1901_s1 + $0x144] ss:$8 sps:$4 sm:$0xff]   ;;  %v1287_v14 = vld [vmem:[%s1901_s1 + $0x40] ss:$8 sps:$4 sm:$0xff]  }
   0x6   :  { %v1291_v15 = vld [vmem:[%s1901_s1 + $0x34] ss:$8 sps:$4 sm:$0xff]   ;;  %v1290_v16 = vld [vmem:[%s1901_s1 + $0x140] ss:$8 sps:$4 sm:$0xff]   ;;  %v1293_v18 = vld [vmem:[%s1901_s1 + $0x30] ss:$8 sps:$4 sm:$0xff]  }
   0x7   :  { %673 = vmatpush1.bf16.msra.mxu0 %v1275_v5  ;;  %v1294_v17 = vld [vmem:[%s1901_s1 + $0x134] ss:$8 sps:$4 sm:$0xff]   ;;  %v1297_v19 = vld [vmem:[%s1901_s1 + $0x24] ss:$8 sps:$4 sm:$0xff]   ;;  %v1296_v20 = vld [vmem:[%s1901_s1 + $0x130] ss:$8 sps:$4 sm:$0xff]  }
   0x8   :  { %674 = vmatprep.subr.bf16.mxu0 %v1279_v8  ;;  %726 = vmatpush1.bf16.msra.mxu1 %v1278_v7  ;;  %v1300_v21 = vld [vmem:[%s1901_s1 + $0x124] ss:$8 sps:$4 sm:$0xff]   ;;  %v1299_v22 = vld [vmem:[%s1901_s1 + $0x20] ss:$8 sps:$4 sm:$0xff]   ;;  %v1303_v23 = vld [vmem:[%s1901_s1 + $0x14] ss:$8 sps:$4 sm:$0xff]  }
   0x9   :  { %727 = vmatprep.subr.bf16.mxu1 %v1282_v10  ;;  %v1302_v24 = vld [vmem:[%s1901_s1 + $0x120] ss:$8 sps:$4 sm:$0xff]   ;;  %v1306_v25 = vld [vmem:[%s1901_s1 + $0x114] ss:$8 sps:$4 sm:$0xff]   ;;  %v1305_v26 = vld [vmem:[%s1901_s1 + $0x10] ss:$8 sps:$4 sm:$0xff]  }
   0xa   :  { %v1309_v27 = vld [vmem:[%s1901_s1 + $0x4] ss:$8 sps:$4 sm:$0xff]   ;;  %v1308_v28 = vld [vmem:[%s1901_s1 + $0x110] ss:$8 sps:$4 sm:$0xff]   ;;  %v1311_v30 = vld [vmem:[%s1901_s1] ss:$8 sps:$4 sm:$0xff]  }
   0xb   :  { %675 = vmatpush1.bf16.msra.mxu0 %v1281_v9  ;;  %v1312_v29 = vld [vmem:[%s1901_s1 + $0x104] ss:$8 sps:$4 sm:$0xff]   ;;  %v1315_v31 = vld [vmem:[%s1901_s1 + $0xf4] ss:$8 sps:$4 sm:$0xff]   ;;  %v1314_v32 = vld [vmem:[%s1901_s1 + $0x100] ss:$8 sps:$4 sm:$0xff]  }
   0xc   :  { %676 = vmatprep.subr.bf16.mxu0 %v1285_v11  ;;  %728 = vmatpush1.bf16.msra.mxu1 %v1284_v12  ;;  %v1318_v33 = vld [vmem:[%s1901_s1 + $0x1f4] ss:$8 sps:$4 sm:$0xff]   ;;  %v1317_v34 = vld [vmem:[%s1901_s1 + $0xf0] ss:$8 sps:$4 sm:$0xff]   ;;  %v1321_v35 = vld [vmem:[%s1901_s1 + $0xe4] ss:$8 sps:$4 sm:$0xff]  }
   0xd   :  { %729 = vmatprep.subr.bf16.mxu1 %v1288_v13  ;;  %v1320_v36 = vld [vmem:[%s1901_s1 + $0x1f0] ss:$8 sps:$4 sm:$0xff]   ;;  %v1324_v37 = vld [vmem:[%s1901_s1 + $0x1e4] ss:$8 sps:$4 sm:$0xff]   ;;  %v1323_v38 = vld [vmem:[%s1901_s1 + $0xe0] ss:$8 sps:$4 sm:$0xff]  }
   0xe   :  { %v1327_v39 = vld [vmem:[%s1901_s1 + $0xd4] ss:$8 sps:$4 sm:$0xff]   ;;  %v1326_v40 = vld [vmem:[%s1901_s1 + $0x1e0] ss:$8 sps:$4 sm:$0xff]   ;;  %v1329_v42 = vld [vmem:[%s1901_s1 + $0xd0] ss:$8 sps:$4 sm:$0xff]  }
   0xf   :  { %677 = vmatpush1.bf16.msra.mxu0 %v1287_v14  ;;  %v1330_v41 = vld [vmem:[%s1901_s1 + $0x1d4] ss:$8 sps:$4 sm:$0xff]   ;;  %v1333_v43 = vld [vmem:[%s1901_s1 + $0xc4] ss:$8 sps:$4 sm:$0xff]   ;;  %v1332_v44 = vld [vmem:[%s1901_s1 + $0x1d0] ss:$8 sps:$4 sm:$0xff]  }
  0x10   :  { %678 = vmatprep.subr.bf16.mxu0 %v1291_v15  ;;  %730 = vmatpush1.bf16.msra.mxu1 %v1290_v16  ;;  %v1336_v45 = vld [vmem:[%s1901_s1 + $0x1c4] ss:$8 sps:$4 sm:$0xff]   ;;  %v1335_v48 = vld [vmem:[%s1901_s1 + $0xc0] ss:$8 sps:$4 sm:$0xff]   ;;  %v1339_v50 = vld [vmem:[%s1901_s1 + $0xb4] ss:$8 sps:$4 sm:$0xff]  }
  0x11   :  { %731 = vmatprep.subr.bf16.mxu1 %v1294_v17  ;;  %v22_v46 = vld [vmem:[%s1902_s0 + $0x8] sm:$0xff]  ;;  %v29_v47 = vld [vmem:[%s1902_s0 + $0x40] sm:$0xff]  ;;  %v24_v52 = vld [vmem:[%s1902_s0 + $0x18] sm:$0xff] }
  0x12   :  { %v50_v49 = vpack.c.bf16 %v29_v47, %v22_v46  ;;  %v1338_v51 = vld [vmem:[%s1901_s1 + $0x1c0] ss:$8 sps:$4 sm:$0xff]   ;;  %v31_v53 = vld [vmem:[%s1902_s0 + $0x50] sm:$0xff]  ;;  %v1345_v57 = vld [vmem:[%s1901_s1 + $0xa4] ss:$8 sps:$4 sm:$0xff]  }
  0x13   :  { %679 = vmatpush1.bf16.msra.mxu0 %v1293_v18  ;;  %v1342_v54 = vld [vmem:[%s1901_s1 + $0x1b4] ss:$8 sps:$4 sm:$0xff]   ;;  %v52_v55 = vpack.c.bf16 %v31_v53, %v24_v52  ;;  %v1341_v56 = vld [vmem:[%s1901_s1 + $0xb0] ss:$8 sps:$4 sm:$0xff]   ;;  %v1348_v59 = vld [vmem:[%s1901_s1 + $0x1a4] ss:$8 sps:$4 sm:$0xff]  }
  0x14   :  { %680 = vmatprep.subr.bf16.mxu0 %v1297_v19  ;;  %732 = vmatpush1.bf16.msra.mxu1 %v1296_v20  ;;  %v1344_v58 = vld [vmem:[%s1901_s1 + $0x1b0] ss:$8 sps:$4 sm:$0xff]   ;;  %v1347_v60 = vld [vmem:[%s1901_s1 + $0xa0] ss:$8 sps:$4 sm:$0xff]   ;;  %v1351_v61 = vld [vmem:[%s1901_s1 + $0x94] ss:$8 sps:$4 sm:$0xff]  }
  0x15   :  { %733 = vmatprep.subr.bf16.mxu1 %v1300_v21  ;;  %702 = vmatprep.mubr.bf16.mxu0 %v50_v49  ;;  %v1350_v62 = vld [vmem:[%s1901_s1 + $0x1a0] ss:$8 sps:$4 sm:$0xff]   ;;  %v1354_v63 = vld [vmem:[%s1901_s1 + $0x194] ss:$8 sps:$4 sm:$0xff]   ;;  %v1353_v0 = vld [vmem:[%s1901_s1 + $0x90] ss:$8 sps:$4 sm:$0xff]  }
  0x16   :  { %755 = vmatprep.mubr.bf16.mxu1 %v52_v55  ;;  %v1356_v1 = vld [vmem:[%s1901_s1 + $0x190] ss:$8 sps:$4 sm:$0xff]   ;;  %v1357_v2 = vld [vmem:[%s1901_s1 + $0x84] ss:$8 sps:$4 sm:$0xff]   ;;  %v1359_v3 = vld [vmem:[%s1901_s1 + $0x80] ss:$8 sps:$4 sm:$0xff]  }
  0x17   :  { %681 = vmatpush1.bf16.msra.mxu0 %v1299_v22  ;;  %v1360_v4 = vld [vmem:[%s1901_s1 + $0x184] ss:$8 sps:$4 sm:$0xff]   ;;  %v1362_v6 = vld [vmem:[%s1901_s1 + $0x180] ss:$8 sps:$4 sm:$0xff]   ;;  %v28_v7 = vld [vmem:[%s1902_s0 + $0x38] sm:$0xff] }
  0x18   :  { %682 = vmatprep.subr.bf16.mxu0 %v1303_v23  ;;  %734 = vmatpush1.bf16.msra.mxu1 %v1302_v24  ;;  %v21_v5 = vld [vmem:[%s1902_s0] sm:$0xff]  ;;  %v1365_v8 = vld [vmem:[%s1901_s1 + $0x274] ss:$8 sps:$4 sm:$0xff]   ;;  %v30_v10 = vld [vmem:[%s1902_s0 + $0x48] sm:$0xff] }
  0x19   :  { %735 = vmatprep.subr.bf16.mxu1 %v1306_v25  ;;  %v23_v9 = vld [vmem:[%s1902_s0 + $0x10] sm:$0xff]  ;;  %v49_v11 = vpack.c.bf16 %v28_v7, %v21_v5  ;;  %v36_v13 = vld [vmem:[%s1902_s0 + $0x78] sm:$0xff]  ;;  %v1368_v16 = vld [vmem:[%s1901_s1 + $0x264] ss:$8 sps:$4 sm:$0xff]  }
  0x1a   :  { %v1363_v12 = vld [vmem:[%s1901_s1 + $0x270] ss:$8 sps:$4 sm:$0xff]   ;;  %v51_v15 = vpack.c.bf16 %v30_v10, %v23_v9  ;;  %v1404_v18 = vld [vmem:[%s1901_s1 + $0x304] ss:$8 sps:$4 sm:$0xff]   ;;  %v1402_v19 = vld [vmem:[%s1901_s1 + $0x300] ss:$8 sps:$4 sm:$0xff]  }
  0x1b   :  { %683 = vmatpush1.bf16.msra.mxu0 %v1305_v26  ;;  %v43_v14 = vld [vmem:[%s1902_s0 + $0xb0] sm:$0xff]  ;;  %v38_v20 = vld [vmem:[%s1902_s0 + $0x88] sm:$0xff]  ;;  %v45_v21 = vld [vmem:[%s1902_s0 + $0xc0] sm:$0xff] }
  0x1c   :  { %684 = vmatprep.subr.bf16.mxu0 %v1309_v27  ;;  %736 = vmatpush1.bf16.msra.mxu1 %v1308_v28  ;;  %v57_v17 = vpack.c.bf16 %v43_v14, %v36_v13  ;;  %v1366_v22 = vld [vmem:[%s1901_s1 + $0x260] ss:$8 sps:$4 sm:$0xff]   ;;  %v1371_v23 = vld [vmem:[%s1901_s1 + $0x254] ss:$8 sps:$4 sm:$0xff]   ;;  %v59_v24 = vpack.c.bf16 %v45_v21, %v38_v20  ;;  %v1386_v49 = vld [vmem:[%s1901_s1 + $0x204] ss:$8 sps:$4 sm:$0xff]  }
  0x1d   :  { %737 = vmatprep.subr.bf16.mxu1 %v1312_v29  ;;  %v35_v25 = vld [vmem:[%s1902_s0 + $0x70] sm:$0xff]  ;;  %v42_v26 = vld [vmem:[%s1902_s0 + $0xa8] sm:$0xff]  ;;  %v37_v27 = vld [vmem:[%s1902_s0 + $0x80] sm:$0xff] }
  0x1e   :  { %v44_v28 = vld [vmem:[%s1902_s0 + $0xb8] sm:$0xff]  ;;  %v56_v29 = vpack.c.bf16 %v42_v26, %v35_v25  ;;  %v41_v46 = vld [vmem:[%s1902_s0 + $0xa0] sm:$0xff]  ;;  %v47_v7 = vld [vmem:[%s1902_s0 + $0xd0] sm:$0xff] }
  0x1f   :  { %685 = vmatpush1.bf16.msra.mxu0 %v1311_v30  ;;  %v1369_v30 = vld [vmem:[%s1901_s1 + $0x250] ss:$8 sps:$4 sm:$0xff]   ;;  %v1389_v52 = vld [vmem:[%s1901_s1 + $0x2f4] ss:$8 sps:$4 sm:$0xff]   ;;  %v1390_v55 = vld [vmem:[%s1901_s1 + $0x2e0] ss:$8 sps:$4 sm:$0xff]  }
  0x20   :  { %686 = vmatprep.subr.bf16.mxu0 %v1315_v31  ;;  %738 = vmatpush1.bf16.msra.mxu1 %v1314_v32  ;;  %v26_v31 = vld [vmem:[%s1902_s0 + $0x28] sm:$0xff]  ;;  %v33_v32 = vld [vmem:[%s1902_s0 + $0x60] sm:$0xff]  ;;  %v48_v47 = vld [vmem:[%s1902_s0 + $0xd8] sm:$0xff] }
  0x21   :  { %739 = vmatprep.subr.bf16.mxu1 %v1318_v33  ;;  %v1374_v33 = vld [vmem:[%s1901_s1 + $0x244] ss:$8 sps:$4 sm:$0xff]   ;;  %v1387_v53 = vld [vmem:[%s1901_s1 + $0x2f0] ss:$8 sps:$4 sm:$0xff]  }
  0x22   :  { %v32_v5 = vld [vmem:[%s1902_s0 + $0x58] sm:$0xff]  ;;  %v39_v10 = vld [vmem:[%s1902_s0 + $0x90] sm:$0xff]  ;;  %v1421_v20 = vld [vmem:[%s1903_s3 + $0x20] sm:$0xff]  }
  0x23   :  { %687 = vmatpush2.bf16.msra.mxu0 %v1317_v34  ;;  %v58_v34 = vpack.c.bf16 %v44_v28, %v37_v27  ;;  %v1414_v13 = vld [vmem:[%s1903_s3 + $0x78] sm:$0xff]   ;;  %v1426_v25 = vld [vmem:[%s1903_s3 + $0x48] sm:$0xff]   ;;  %v1428_v27 = vld [vmem:[%s1903_s3 + $0x40] sm:$0xff]  }
  0x24   :  { %688 = vmatprep.subr.bf16.mxu0 %v1321_v35  ;;  %740 = vmatpush2.bf16.msra.mxu1 %v1320_v36  ;;  %v54_v35 = vpack.c.bf16 %v33_v32, %v26_v31  ;;  %v1372_v36 = vld [vmem:[%s1901_s1 + $0x240] ss:$8 sps:$4 sm:$0xff]   ;;  %v1415_v14 = vld [vmem:[%s1903_s3 + $0x38] sm:$0xff]  }
  0x25   :  { %741 = vmatprep.subr.bf16.mxu1 %v1324_v37  ;;  %v1377_v37 = vld [vmem:[%s1901_s1 + $0x234] ss:$8 sps:$4 sm:$0xff]   ;;  %v1427_v26 = vld [vmem:[%s1903_s3 + $0x8] sm:$0xff]   ;;  %v1429_v28 = vld [vmem:[%s1903_s3] sm:$0xff]  }
  0x26   :  { %v1422_v21 = vld [vmem:[%s1903_s3 + $0x58] sm:$0xff]  }
  0x27   :  { %689 = vmatpush2.bf16.msra.mxu0 %v1323_v38  ;;  %v1430_v38 = vmov 0  }
  0x28   :  { %690 = vmatprep.subr.bf16.mxu0 %v1327_v39  ;;  %742 = vmatpush2.bf16.msra.mxu1 %v1326_v40  ;;  %v27_v39 = vld [vmem:[%s1902_s0 + $0x30] sm:$0xff]  ;;  %v34_v40 = vld [vmem:[%s1902_s0 + $0x68] sm:$0xff] }
  0x29   :  { %743 = vmatprep.subr.bf16.mxu1 %v1330_v41  ;;  %v1375_v41 = vld [vmem:[%s1901_s1 + $0x230] ss:$8 sps:$4 sm:$0xff]  }
  0x2b   :  { %691 = vmatpush2.bf16.msra.mxu0 %v1329_v42  ;;  %v1380_v42 = vld [vmem:[%s1901_s1 + $0x224] ss:$8 sps:$4 sm:$0xff]  }
  0x2c   :  { %692 = vmatprep.subr.bf16.mxu0 %v1333_v43  ;;  %744 = vmatpush2.bf16.msra.mxu1 %v1332_v44  ;;  %v55_v43 = vpack.c.bf16 %v34_v40, %v27_v39  ;;  %v1378_v44 = vld [vmem:[%s1901_s1 + $0x220] ss:$8 sps:$4 sm:$0xff]   ;;  %v163_v39 = vlaneseq }
  0x2d   :  { %745 = vmatprep.subr.bf16.mxu1 %v1336_v45  ;;  %v1383_v45 = vld [vmem:[%s1901_s1 + $0x214] ss:$8 sps:$4 sm:$0xff]  }
  0x2f   :  { %693 = vmatpush2.bf16.msra.mxu0 %v1335_v48  ;;  %v1381_v48 = vld [vmem:[%s1901_s1 + $0x210] ss:$8 sps:$4 sm:$0xff]  }
  0x30   :  { %694 = vmatprep.subr.bf16.mxu0 %v1339_v50  ;;  %746 = vmatpush2.bf16.msra.mxu1 %v1338_v51  ;;  %v62_v50 = vpack.c.bf16 %v48_v47, %v41_v46  ;;  %v1384_v51 = vld [vmem:[%s1901_s1 + $0x200] ss:$8 sps:$4 sm:$0xff]  }
  0x31   :  { %747 = vmatprep.subr.bf16.mxu1 %v1342_v54  ;;  %v1392_v54 = vld [vmem:[%s1901_s1 + $0x2e4] ss:$8 sps:$4 sm:$0xff]   ;;  %v161_v46 = vld [vmem:[%s1904_s2] sm:$0x3] }
  0x33   :  { %695 = vmatpush2.bf16.msra.mxu0 %v1341_v56  ;;  %v1395_v56 = vld [vmem:[%s1901_s1 + $0x2d4] ss:$8 sps:$4 sm:$0xff]  }
  0x34   :  { %696 = vmatprep.subr.bf16.mxu0 %v1345_v57  ;;  %748 = vmatpush2.bf16.msra.mxu1 %v1344_v58  ;;  %v1393_v57 = vld [vmem:[%s1901_s1 + $0x2d0] ss:$8 sps:$4 sm:$0xff]   ;;  %v1398_v58 = vld [vmem:[%s1901_s1 + $0x2c4] ss:$8 sps:$4 sm:$0xff]  }
  0x35   :  { %749 = vmatprep.subr.bf16.mxu1 %v1348_v59  ;;  %v1396_v59 = vld [vmem:[%s1901_s1 + $0x2c0] ss:$8 sps:$4 sm:$0xff]  }
  0x37   :  { %697 = vmatpush2.bf16.msra.mxu0 %v1347_v60  ;;  %v1401_v60 = vld [vmem:[%s1901_s1 + $0x2b4] ss:$8 sps:$4 sm:$0xff]  }
  0x38   :  { %698 = vmatprep.subr.bf16.mxu0 %v1351_v61  ;;  %750 = vmatpush2.bf16.msra.mxu1 %v1350_v62  ;;  %v1399_v61 = vld [vmem:[%s1901_s1 + $0x2b0] ss:$8 sps:$4 sm:$0xff]   ;;  %v1407_v62 = vld [vmem:[%s1901_s1 + $0x2a4] ss:$8 sps:$4 sm:$0xff]  }
  0x39   :  { %751 = vmatprep.subr.bf16.mxu1 %v1354_v63  ;;  %v1405_v63 = vld [vmem:[%s1901_s1 + $0x2a0] ss:$8 sps:$4 sm:$0xff]  }
  0x3b   :  { %699 = vmatpush2.bf16.msra.mxu0 %v1353_v0  ;;  %v1410_v0 = vld [vmem:[%s1901_s1 + $0x294] ss:$8 sps:$4 sm:$0xff]  }
  0x3c   :  { %700 = vmatprep.subr.bf16.mxu0 %v1357_v2  ;;  %752 = vmatpush2.bf16.msra.mxu1 %v1356_v1  ;;  %v1408_v1 = vld [vmem:[%s1901_s1 + $0x290] ss:$8 sps:$4 sm:$0xff]   ;;  %v1413_v2 = vld [vmem:[%s1901_s1 + $0x284] ss:$8 sps:$4 sm:$0xff]  }
  0x3d   :  { %753 = vmatprep.subr.bf16.mxu1 %v1360_v4  ;;  %v25_v4 = vld [vmem:[%s1902_s0 + $0x20] sm:$0xff] }
  0x3f   :  { %701 = vmatpush2.bf16.msra.mxu0 %v1359_v3  ;;  %v1411_v3 = vld [vmem:[%s1901_s1 + $0x280] ss:$8 sps:$4 sm:$0xff]  }
  0x40   :  { %776 = vmatprep.subr.bf16.mxu0 %v1365_v8  ;;  %754 = vmatpush2.bf16.msra.mxu1 %v1362_v6  ;;  %v40_v6 = vld [vmem:[%s1902_s0 + $0x98] sm:$0xff]  ;;  %v53_v8 = vpack.c.bf16 %v32_v5, %v25_v4 }
  0x41   :  { %843 = vmatprep.subr.bf16.mxu1 %v1404_v18  ;;  %v61_v9 = vpack.c.bf16 %v47_v7, %v40_v6  ;;  %v1419_v18 = vld [vmem:[%s1903_s3 + $0x28] sm:$0xff]  }
  0x42   :  { %703 = vmatmul.mubr.bf16.vlgmr.msra.gmra.mxu0 %v49_v11  ;;  %v46_v11 = vld [vmem:[%s1902_s0 + $0xc8] sm:$0xff] }
  0x43   :  { %777 = vmatpush1.bf16.msra.mxu0 %v1363_v12  ;;  %712 = vmatprep.mubr.bf16.mxu0 %v57_v17  ;;  %v60_v12 = vpack.c.bf16 %v46_v11, %v39_v10  ;;  %v1418_v17 = vld [vmem:[%s1903_s3 + $0x68] sm:$0xff]  }
  0x44   :  { %756 = vmatmul.mubr.bf16.vlgmr.msra.gmra.mxu1 %v51_v15  ;;  %778 = vmatprep.subr.bf16.mxu0 %v1368_v16  ;;  %v1416_v15 = vld [vmem:[%s1903_s3 + $0x70] sm:$0xff]  }
  0x45   :  { %844 = vmatpush1.bf16.msra.mxu1 %v1402_v19  ;;  %765 = vmatprep.mubr.bf16.mxu1 %v59_v24  ;;  %v1417_v16 = vld [vmem:[%s1903_s3 + $0x30] sm:$0xff]   ;;  %v1420_v19 = vld [vmem:[%s1903_s3 + $0x60] sm:$0xff]  }
  0x46   :  { %1238 = vmatprep.subr.bf16.mxu1 %v1414_v13  ;;  %v1425_v24 = vld [vmem:[%s1903_s3 + $0x10] sm:$0xff]  }
  0x47   :  { %779 = vmatpush1.bf16.msra.mxu0 %v1366_v22  ;;  %v1423_v22 = vld [vmem:[%s1903_s3 + $0x18] sm:$0xff]  }
  0x48   :  { %780 = vmatprep.subr.bf16.mxu0 %v1371_v23  ;;  %v1424_v23 = vld [vmem:[%s1903_s3 + $0x50] sm:$0xff]  }
  0x4a   :  { %713 = vmatmul.mubr.bf16.gmra.mxu0 %v56_v29 }
  0x4b   :  { %781 = vmatpush1.bf16.msra.mxu0 %v1369_v30  ;;  %808 = vmatprep.mubr.bf16.mxu0 %v54_v35 }
  0x4c   :  { %782 = vmatprep.subr.bf16.mxu0 %v1374_v33  ;;  %766 = vmatmul.mubr.bf16.gmra.mxu1 %v58_v34 }
  0x4d   :  { %861 = vmatprep.mubr.bf16.mxu1 %v1430_v38 }
  0x4f   :  { %783 = vmatpush1.bf16.msra.mxu0 %v1372_v36 }
  0x50   :  { %784 = vmatprep.subr.bf16.mxu0 %v1377_v37 }
  0x53   :  { %785 = vmatpush1.bf16.msra.mxu0 %v1375_v41 }
  0x54   :  { %786 = vmatprep.subr.bf16.mxu0 %v1380_v42  ;;  %1200 = vmatmul.mubr.msk.bf16.vlgmr.msra.gmra.mxu1 %vm663_vm0, %v55_v43  ;;  %v164_v42 = vshrl.u32 %v163_v39, 7 }
  0x55   :  { %871 = vmatprep.mubr.bf16.mxu1 %v1430_v38  ;;  %1239 = vmatpush3.bf16.msra.mxu1 %v1415_v14 }
  0x56   :  { %1240 = vmatprep.subr.bf16.mxu1 %v1416_v15  ;;  %v165_v47 = vsub.s32 0, %v164_v42 }
  0x57   :  { %787 = vmatpush1.bf16.msra.mxu0 %v1378_v44 }
  0x58   :  { %788 = vmatprep.subr.bf16.mxu0 %v1383_v45  ;;  %v169_v45 = vsub.s32 1, %v164_v42 }
  0x59   :  { %1241 = vmatpush3.bf16.msra.mxu1 %v1417_v16 }
  0x5a   :  { %1242 = vmatprep.subr.bf16.mxu1 %v1418_v17 }
  0x5b   :  { %789 = vmatpush1.bf16.msra.mxu0 %v1381_v48 }
  0x5c   :  { %790 = vmatprep.subr.bf16.mxu0 %v1386_v49  ;;  %1201 = vmatmul.mubr.msk.bf16.gmra.mxu1 %vm663_vm0, %v62_v50  ;;  %v170_v50 = vrot.slane %v161_v46, %v169_v45 }
  0x5d   :  { %1243 = vmatpush3.bf16.msra.mxu1 %v1419_v18 }
  0x5e   :  { %1244 = vmatprep.subr.bf16.mxu1 %v1420_v19 }
  0x5f   :  { %791 = vmatpush1.bf16.msra.mxu0 %v1384_v51  ;;  %v166_v51 = vrot.slane %v161_v46, %v165_v47 }
  0x60   :  { %792 = vmatprep.subr.bf16.mxu0 %v1389_v52 }
  0x61   :  { %1245 = vmatpush3.bf16.msra.mxu1 %v1421_v20 }
  0x62   :  { %1246 = vmatprep.subr.bf16.mxu1 %v1422_v21 }
  0x63   :  { %793 = vmatpush2.bf16.msra.mxu0 %v1387_v53 }
  0x64   :  { %794 = vmatprep.subr.bf16.mxu0 %v1392_v54 }
  0x65   :  { %1247 = vmatpush3.bf16.msra.mxu1 %v1423_v22 }
  0x66   :  { %1248 = vmatprep.subr.bf16.mxu1 %v1424_v23 }
  0x67   :  { %795 = vmatpush2.bf16.msra.mxu0 %v1390_v55 }
  0x68   :  { %796 = vmatprep.subr.bf16.mxu0 %v1395_v56 }
  0x69   :  { %1249 = vmatpush3.bf16.msra.mxu1 %v1425_v24 }
  0x6a   :  { %1250 = vmatprep.subr.bf16.mxu1 %v1426_v25 }
  0x6b   :  { %797 = vmatpush2.bf16.msra.mxu0 %v1393_v57 }
  0x6c   :  { %798 = vmatprep.subr.bf16.mxu0 %v1398_v58 }
  0x6d   :  { %1251 = vmatpush3.bf16.msra.mxu1 %v1427_v26 }
  0x6e   :  { %1252 = vmatprep.subr.bf16.mxu1 %v1428_v27 }
  0x6f   :  { %799 = vmatpush2.bf16.msra.mxu0 %v1396_v59 }
  0x70   :  { %800 = vmatprep.subr.bf16.mxu0 %v1401_v60 }
  0x71   :  { %1253 = vmatpush3.bf16.msra.mxu1 %v1429_v28 }
  0x73   :  { %801 = vmatpush2.bf16.msra.mxu0 %v1399_v61 }
  0x74   :  { %802 = vmatprep.subr.bf16.mxu0 %v1407_v62 }
  0x77   :  { %803 = vmatpush2.bf16.msra.mxu0 %v1405_v63 }
  0x78   :  { %804 = vmatprep.subr.bf16.mxu0 %v1410_v0 }
  0x7b   :  { %805 = vmatpush2.bf16.msra.mxu0 %v1408_v1 }
  0x7c   :  { %806 = vmatprep.subr.bf16.mxu0 %v1413_v2 }
  0x7f   :  { %807 = vmatpush2.bf16.msra.mxu0 %v1411_v3 }
  0x82   :  { %809 = vmatmul.mubr.bf16.vlgmr.msra.gmra.mxu0 %v53_v8 }
  0x83   :  { %818 = vmatprep.mubr.bf16.mxu0 %v61_v9 }
  0x8a   :  { %819 = vmatmul.mubr.bf16.gmra.mxu0 %v60_v12 }
 0x102   :  { %v704_v33 = vpop.f32.mrf.mxu0 }
 0x103   :  { %v705_v55 = vadd.f32 %v704_v33, %v166_v51 }
 0x104   :  { %v757_v29 = vpop.f32.mrf.mxu1  ;;  %v706_v35 = vpop.f32.mrf.mxu0 }
 0x105   :  { %v707_v54 = vadd.f32 %v706_v35, %v170_v50  ;;  %v758_v62 = vadd.f32 %v757_v29, %v705_v55 }
 0x106   :  { %v759_v30 = vpop.f32.mrf.mxu1  ;;  %v708_v37 = vpop.f32.mrf.mxu0 }
 0x107   :  { %v709_v57 = vadd.f32 %v708_v37, %v166_v51  ;;  %v760_v60 = vadd.f32 %v759_v30, %v707_v54 }
 0x108   :  { %v761_v31 = vpop.f32.mrf.mxu1  ;;  %v710_v40 = vpop.f32.mrf.mxu0 }
 0x109   :  { %v711_v61 = vadd.f32 %v710_v40, %v170_v50  ;;  %v762_v0 = vadd.f32 %v761_v31, %v709_v57 }
 0x10a   :  { %v763_v32 = vpop.f32.mrf.mxu1  ;;  %v714_v43 = vpop.f32.mrf.mxu0 }
 0x10b   :  { %v764_v5 = vadd.f32 %v763_v32, %v711_v61  ;;  %v715_v8 = vadd.f32 %v714_v43, %v166_v51 }
 0x10c   :  { %v767_v34 = vpop.f32.mrf.mxu1  ;;  %v716_v48 = vpop.f32.mrf.mxu0 }
 0x10d   :  { %v717_v6 = vadd.f32 %v716_v48, %v170_v50  ;;  %v768_v20 = vadd.f32 %v767_v34, %v715_v8 }
 0x10e   :  { %v769_v36 = vpop.f32.mrf.mxu1  ;;  %v718_v52 = vpop.f32.mrf.mxu0 }
 0x10f   :  { %v719_v10 = vadd.f32 %v718_v52, %v166_v51  ;;  %v770_v17 = vadd.f32 %v769_v36, %v717_v6  ;;  %v1202_v52 = vld [vmem:[%s1905_s4] ss:$0 sm:$0xff] }
 0x110   :  { %v771_v38 = vpop.f32.mrf.mxu1  ;;  %v720_v56 = vpop.f32.mrf.mxu0 }
 0x111   :  { %v721_v18 = vadd.f32 %v720_v56, %v170_v50  ;;  %v772_v23 = vadd.f32 %v771_v38, %v719_v10 }
 0x112   :  { %v773_v41 = vpop.f32.mrf.mxu1 }
 0x113   :  { %v774_v31 = vadd.f32 %v773_v41, %v721_v18 }
 0x114   :  { %v863_v44 = vpop.f32.mrf.mxu1 }
 0x116   :  { %v865_v49 = vpop.f32.mrf.mxu1 }
 0x118   :  { %v867_v53 = vpop.f32.mrf.mxu1 }
 0x11a   :  { %v869_v59 = vpop.f32.mrf.mxu1 }
 0x11c   :  { %v873_v4 = vpop.f32.mrf.mxu1 }
 0x11e   :  { %v875_v15 = vpop.f32.mrf.mxu1 }
 0x120   :  { %v877_v29 = vpop.f32.mrf.mxu1 }
 0x122   :  { %v879_v42 = vpop.f32.mrf.mxu1 }
 0x142   :  { %v810_v58 = vpop.f32.mrf.mxu0 }
 0x143   :  { %v811_v2 = vadd.f32 %v810_v58, %v758_v62 }
 0x144   :  { %v812_v63 = vpop.f32.mrf.mxu0 }
 0x145   :  { %v813_v1 = vadd.f32 %v812_v63, %v760_v60  ;;  %v864_v14 = vadd.f32 %v863_v44, %v811_v2 }
 0x146   :  { %v814_v3 = vpop.f32.mrf.mxu0 }
 0x147   :  { %v815_v7 = vadd.f32 %v814_v3, %v762_v0  ;;  %v866_v11 = vadd.f32 %v865_v49, %v813_v1  ;;  %v882_v27 = vmax.f32 %v864_v14, 0.0 }
 0x148   :  { %v816_v9 = vpop.f32.mrf.mxu0 }
 0x149   :  { %v868_v12 = vadd.f32 %v867_v53, %v815_v7  ;;  %v817_v13 = vadd.f32 %v816_v9, %v764_v5  ;;  %v883_v24 = vmax.f32 %v866_v11, 0.0 }
 0x14a   :  { %v820_v16 = vpop.f32.mrf.mxu0 }
 0x14b   :  { %v870_v19 = vadd.f32 %v869_v59, %v817_v13  ;;  %v884_v21 = vmax.f32 %v868_v12, 0.0  ;;  %v821_v28 = vadd.f32 %v820_v16, %v768_v20 }
 0x14c   :  { %v822_v22 = vpop.f32.mrf.mxu0 }
 0x14d   :  { %v885_v25 = vmax.f32 %v870_v19, 0.0  ;;  %v823_v26 = vadd.f32 %v822_v22, %v770_v17  ;;  %v890_v35 = vpack.c.bf16 %v884_v21, %v882_v27  ;;  %v874_v34 = vadd.f32 %v873_v4, %v821_v28 }
 0x14e   :  { %v824_v30 = vpop.f32.mrf.mxu0 }
 0x14f   :  { %v825_v32 = vadd.f32 %v824_v30, %v772_v23  ;;  %v891_v33 = vpack.c.bf16 %v885_v25, %v883_v24  ;;  %v876_v39 = vadd.f32 %v875_v15, %v823_v26  ;;  %v886_v46 = vmax.f32 %v874_v34, 0.0 }
 0x150   :  { %v826_v37 = vpop.f32.mrf.mxu0 }
 0x151   :  { %v878_v36 = vadd.f32 %v877_v29, %v825_v32  ;;  %v827_v40 = vadd.f32 %v826_v37, %v774_v31  ;;  %1061 = vmatprep.mubr.bf16.mxu1 %v891_v33  ;;  %v887_v44 = vmax.f32 %v876_v39, 0.0 }
 0x152   :  { %1062 = vmatmul.mubr.bf16.vlgmr.msra.gmra.mxu1 %v890_v35 }
 0x153   :  { %v880_v38 = vadd.f32 %v879_v42, %v827_v40  ;;  %v888_v43 = vmax.f32 %v878_v36, 0.0 }
 0x155   :  { %v889_v45 = vmax.f32 %v880_v38, 0.0  ;;  %v892_v48 = vpack.c.bf16 %v888_v43, %v886_v46 }
 0x157   :  { %v893_v47 = vpack.c.bf16 %v889_v45, %v887_v44 }
 0x159   :  { %1069 = vmatprep.mubr.bf16.mxu1 %v893_v47 }
 0x15a   :  { %1070 = vmatmul.mubr.bf16.gmra.mxu1 %v892_v48 }
 0x212   :  { %v1254_v41 = vpop.f32.mrf.mxu1 }
 0x214   :  { %v1255_v49 = vpop.f32.mrf.mxu1 }
 0x215   :  { %v1256_v51 = vadd.f32 %v1255_v49, %v1254_v41 }
 0x216   :  { %v1257_v50 = vpop.f32.mrf.mxu1 }
 0x217   :  { %v1064_v56 = vadd.f32 %v1256_v51, %v1202_v52 }
 0x218   :  { %v1258_v53 = vpop.f32.mrf.mxu1 }
 0x219   :  { %v1259_v54 = vadd.f32 %v1258_v53, %v1257_v50 }
 0x21a   :  { %v1260_v55 = vpop.f32.mrf.mxu1 }
 0x21b   :  { %v1067_v57 = vadd.f32 %v1259_v54, %v1202_v52 }
 0x21c   :  { %v1261_v58 = vpop.f32.mrf.mxu1 }
 0x21d   :  { %v1230_v59 = vpack.c.bf16 %v1067_v57, %v1064_v56  ;;  %v1262_v61 = vadd.f32 %v1261_v58, %v1260_v55 }
 0x21e   :  { %v1263_v60 = vpop.f32.mrf.mxu1 }
 0x21f   :  { %1231 = vst [vmem:[%s1906_s5] sm:$0xff] %v1230_v59   ;;  %v1072_v0 = vadd.f32 %v1262_v61, %v1202_v52 }
 0x220   :  { %v1264_v62 = vpop.f32.mrf.mxu1 }
 0x221   :  { %v1265_v63 = vadd.f32 %v1264_v62, %v1263_v60 }
 0x223   :  { %v1075_v1 = vadd.f32 %v1265_v63, %v1202_v52 }
 0x225   :  { %v1235_v2 = vpack.c.bf16 %v1075_v1, %v1072_v0 }
 0x227   :  { %1237 = vst [vmem:[%s1906_s5 + $0x8] sm:$0xff] %v1235_v2  }

</bundles_post_ra>
